<compile_context>
chip_gen: v7x
topology: tpu7x:2x2x1
jax: 0.10.0
libtpu: 0.0.40
codegen_flags: <defaults>
</compile_context>

<pallas_src>
import functools

import jax
import jax.numpy as jnp
from jax import lax
from jax.experimental import pallas as pl
from jax.experimental.pallas import tpu as pltpu

EPS = 1e-5
MOMENTUM = 0.9

_VMEM_LIMIT = 32 * 1024 * 1024      # explicit scoped-VMEM limit, safe on all gens
_TILE_ELEMS = 512 * 1024            # ~2 MiB of f32 per x tile
_T_CAP = 8192                       # lane-dim cap => per-step unroll <= 64 groups
_FUSED_BYTES = 4 * 1024 * 1024      # fused single-call path if f32(x) <= 4 MiB


# --------------------------------------------------------------------------
# Fused path: whole activation resident in VMEM, single read of x.
# --------------------------------------------------------------------------
def _fused_kernel(x_ref, g_ref, b_ref, mm_ref, mv_ref,
                  y_ref, new_mm_ref, new_mv_ref, *, inv_m):
    x = x_ref[...].astype(jnp.float32)                       # (N, C, HW)
    # centered two-pass variance (matches reference numerics exactly)
    mean = jnp.sum(jnp.sum(x, axis=2, keepdims=True),
                   axis=0, keepdims=True) * inv_m            # (1, C, 1)
    xc = x - mean
    var = jnp.sum(jnp.sum(xc * xc, axis=2, keepdims=True),
                  axis=0, keepdims=True) * inv_m              # (1, C, 1)
    inv_std = lax.rsqrt(var + EPS)                            # EUP, once per C
    scale = g_ref[...] * inv_std
    y_ref[...] = (xc * scale + b_ref[...]).astype(y_ref.dtype)
    new_mm_ref[...] = MOMENTUM * mm_ref[...] + (1.0 - MOMENTUM) * mean
    # Faithful to the PyTorch source: moving_var update is a no-op.
    new_mv_ref[...] = MOMENTUM * mv_ref[...] + (1.0 - MOMENTUM) * mv_ref[...]


# --------------------------------------------------------------------------
# Streaming path, pass 1: per-(n, c-block) partial sums / sums-of-squares.
# --------------------------------------------------------------------------
def _stats_kernel(x_ref, psum_ref, psq_ref, sum_acc, sq_acc):
    t = pl.program_id(2)

    @pl.when(t == 0)
    def _():
        sum_acc[...] = jnp.zeros_like(sum_acc)
        sq_acc[...] = jnp.zeros_like(sq_acc)

    x = x_ref[...].astype(jnp.float32)                        # (C_blk, T)
    T = x.shape[-1]
    if T % 128 == 0:
        # VALU-only accumulation per 128-lane group; no per-step XLU reduce.
        s = sum_acc[...]
        q = sq_acc[...]
        for k in range(T // 128):
            xs = x[:, k * 128:(k + 1) * 128]
            s = s + xs
            q = q + xs * xs
        sum_acc[...] = s
        sq_acc[...] = q
    else:
        # full-row fallback (HW has no multiple-of-128 divisor): reduce now.
        sum_acc[:, 0:1] += jnp.sum(x, axis=-1, keepdims=True)
        sq_acc[:, 0:1] += jnp.sum(x * x, axis=-1, keepdims=True)

    @pl.when(t == pl.num_programs(2) - 1)
    def _():
        # single lanes->1 reduce per (n, c) block, off the hot loop.
        psum_ref[...] = jnp.sum(sum_acc[...], axis=-1, keepdims=True)
        psq_ref[...] = jnp.sum(sq_acc[...], axis=-1, keepdims=True)


# --------------------------------------------------------------------------
# Streaming path, pass 2: y = x * scale + shift (folded affine).
# --------------------------------------------------------------------------
def _norm_kernel(x_ref, scale_ref, shift_ref, y_ref):
    x = x_ref[...].astype(jnp.float32)                        # (C_blk, T)
    y_ref[...] = (x * scale_ref[...] + shift_ref[...]).astype(y_ref.dtype)


def _choose_tiling(C, HW):
    """Pick (C_blk, T) so the (C_blk, T) f32 tile is ~<=2 MiB, T is a
    multiple of 128 dividing HW when possible (lane-dense, unmasked vst),
    otherwise the full row with the channel axis blocked instead."""
    t_divs = [t for t in range(128, min(HW, _T_CAP) + 1, 128) if HW % t == 0]
    if t_divs:
        fits = [t for t in t_divs if C * t <= _TILE_ELEMS]
        if fits:
            T = max(fits)
        else:
            T = max([t for t in t_divs if 8 * t <= _TILE_ELEMS] or [t_divs[0]])
    else:
        # TODO(synk): tiny C with huge non-128-divisible HW would want a
        # masked remainder tile; full-row fallback is used here.
        T = HW
    if C * T <= _TILE_ELEMS or C <= 8:
        C_blk = C
    else:
        cands = [c for c in range(8, C, 8) if C % c == 0 and c * T <= _TILE_ELEMS]
        C_blk = max(cands) if cands else C
    return C_blk, T


def _two_pass(x3d, g, b, mm, mv, N, C, HW, out_dtype):
    M = N * HW
    C_blk, T = _choose_tiling(C, HW)
    n_c = C // C_blk
    n_t = HW // T

    x_spec = pl.BlockSpec((None, C_blk, T), lambda n, c, t: (n, c, t))
    part_spec = pl.BlockSpec((None, C_blk, 1), lambda n, c, t: (n, c, 0))

    # ---- pass 1: per-(n, c-block) partial statistics (N, C axes parallel) ----
    psum, psq = pl.pallas_call(
        _stats_kernel,
        grid=(N, n_c, n_t),
        in_specs=[x_spec],
        out_specs=(part_spec, part_spec),
        out_shape=(
            jax.ShapeDtypeStruct((N, C, 1), jnp.float32),
            jax.ShapeDtypeStruct((N, C, 1), jnp.float32),
        ),
        scratch_shapes=[pltpu.VMEM((C_blk, 128), jnp.float32),
                        pltpu.VMEM((C_blk, 128), jnp.float32)],
        compiler_params=pltpu.CompilerParams(
            dimension_semantics=("parallel", "parallel", "arbitrary"),
            vmem_limit_bytes=_VMEM_LIMIT),
    )(x3d)

    # ---- tiny finalize in plain JAX: (N,C,1) -> (C,1) scale/shift/moving ----
    inv_m = 1.0 / M
    sums = jnp.sum(psum, axis=0)                              # (C, 1)
    sqs = jnp.sum(psq, axis=0)                                # (C, 1)
    mean = sums * inv_m
    # E[x^2] - mean^2; clamp tiny negatives from f32 cancellation.
    var = jnp.maximum(sqs * inv_m - mean * mean, 0.0)
    inv_std = lax.rsqrt(var + EPS)
    scale = g * inv_std
    shift = b - mean * scale
    new_mm = MOMENTUM * mm + (1.0 - MOMENTUM) * mean
    new_mv = MOMENTUM * mv + (1.0 - MOMENTUM) * mv            # faithful no-op

    # ---- pass 2: normalize (fully parallel, lane-dense tiles) ----
    ps_spec = pl.BlockSpec((C_blk, 1), lambda n, c, t: (c, 0))
    y3d = pl.pallas_call(
        _norm_kernel,
        grid=(N, n_c, n_t),
        in_specs=[x_spec, ps_spec, ps_spec],
        out_specs=x_spec,
        out_shape=jax.ShapeDtypeStruct((N, C, HW), out_dtype),
        compiler_params=pltpu.CompilerParams(
            dimension_semantics=("parallel", "parallel", "parallel"),
            vmem_limit_bytes=_VMEM_LIMIT),
    )(x3d, scale, shift)

    return y3d, new_mm, new_mv


def batch_norm_pallas(x_nchw, gamma, beta, moving_mean, moving_var, *,
                      allow_fused=True):
    """x_nchw: (N, C, H, W); gamma/beta/moving_*: (1, C, 1, 1).

    Returns (Y in NCHW, new_moving_mean (1,C,1,1), new_moving_var (1,C,1,1)).
    """
    N, C, H, W = x_nchw.shape
    HW = H * W
    x3d = x_nchw.reshape(N, C, HW)                # contiguous reshape, no copy

    if allow_fused and N * C * HW * 4 <= _FUSED_BYTES:
        g = gamma.reshape(1, C, 1).astype(jnp.float32)
        b = beta.reshape(1, C, 1).astype(jnp.float32)
        mm = moving_mean.reshape(1, C, 1).astype(jnp.float32)
        mv = moving_var.reshape(1, C, 1).astype(jnp.float32)
        y3d, new_mm, new_mv = pl.pallas_call(
            functools.partial(_fused_kernel, inv_m=1.0 / (N * HW)),
            out_shape=(
                jax.ShapeDtypeStruct((N, C, HW), x_nchw.dtype),
                jax.ShapeDtypeStruct((1, C, 1), jnp.float32),
                jax.ShapeDtypeStruct((1, C, 1), jnp.float32),
            ),
            compiler_params=pltpu.CompilerParams(vmem_limit_bytes=_VMEM_LIMIT),
        )(x3d, g, b, mm, mv)
    else:
        g = gamma.reshape(C, 1).astype(jnp.float32)
        b = beta.reshape(C, 1).astype(jnp.float32)
        mm = moving_mean.reshape(C, 1).astype(jnp.float32)
        mv = moving_var.reshape(C, 1).astype(jnp.float32)
        y3d, new_mm, new_mv = _two_pass(x3d, g, b, mm, mv, N, C, HW,
                                        x_nchw.dtype)

    y = y3d.reshape(N, C, H, W)
    new_mm = new_mm.reshape(1, C, 1, 1).astype(moving_mean.dtype)
    new_mv = new_mv.reshape(1, C, 1, 1).astype(moving_var.dtype)
    return y, new_mm, new_mv


def _reference(x, gamma, beta, moving_mean, moving_var):
    mean = x.mean(axis=(0, 2, 3), keepdims=True)
    var = ((x - mean) ** 2).mean(axis=(0, 2, 3), keepdims=True)
    x_hat = (x - mean) / jnp.sqrt(var + EPS)
    y = gamma * x_hat + beta
    new_mm = MOMENTUM * moving_mean + (1.0 - MOMENTUM) * mean
    new_mv = MOMENTUM * moving_var + (1.0 - MOMENTUM) * moving_var
    return y, new_mm, new_mv


def _check(y, mm, mv, y_ref, mm_ref, mv_ref):
    assert jnp.allclose(y, y_ref, atol=1e-4, rtol=1e-4)
    assert jnp.allclose(mm, mm_ref, atol=1e-5, rtol=1e-5)
    assert jnp.allclose(mv, mv_ref, atol=1e-6, rtol=1e-6)


if __name__ == "__main__":
    key = jax.random.PRNGKey(0)
    k1, k2, k3, k4 = jax.random.split(key, 4)

    # ---- case 1: module-init params, small conv map -> fused VMEM path ----
    N, C, H, W = 2, 4, 16, 16
    x = jax.random.normal(k1, (N, C, H, W), dtype=jnp.float32) * 2.0 + 0.5
    gamma = jnp.ones((1, C, 1, 1), dtype=jnp.float32)
    beta = jnp.zeros((1, C, 1, 1), dtype=jnp.float32)
    moving_mean = jnp.zeros((1, C, 1, 1), dtype=jnp.float32)
    moving_var = jnp.ones((1, C, 1, 1), dtype=jnp.float32)

    out = batch_norm_pallas(x, gamma, beta, moving_mean, moving_var)
    jax.block_until_ready(out)
    _check(*out, *_reference(x, gamma, beta, moving_mean, moving_var))

    # ---- case 2: same inputs, streaming two-pass path forced ----
    out2 = batch_norm_pallas(x, gamma, beta, moving_mean, moving_var,
                             allow_fused=False)
    jax.block_until_ready(out2)
    _check(*out2, *_reference(x, gamma, beta, moving_mean, moving_var))

    # ---- case 3: HW not a multiple of 128 (7x7), non-trivial affine ----
    N3, C3, H3, W3 = 2, 8, 7, 7
    x3 = jax.random.normal(k2, (N3, C3, H3, W3), dtype=jnp.float32)
    gamma3 = 1.0 + 0.1 * jax.random.normal(k3, (1, C3, 1, 1), jnp.float32)
    beta3 = 0.1 * jax.random.normal(k4, (1, C3, 1, 1), jnp.float32)
    mm3 = jnp.zeros((1, C3, 1, 1), jnp.float32)
    mv3 = jnp.ones((1, C3, 1, 1), jnp.float32)
    out3 = batch_norm_pallas(x3, gamma3, beta3, mm3, mv3, allow_fused=False)
    jax.block_until_ready(out3)
    _check(*out3, *_reference(x3, gamma3, beta3, mm3, mv3))

    print("KERNEL_OK")
</pallas_src>

<mosaic_0001>
module attributes {stable_mosaic.version = 11 : i64} {
  func.func @_fused_kernel(%arg0: memref<2x4x256xf32, #tpu.memory_space<vmem>>, %arg1: memref<1x4x1xf32, #tpu.memory_space<vmem>>, %arg2: memref<1x4x1xf32, #tpu.memory_space<vmem>>, %arg3: memref<1x4x1xf32, #tpu.memory_space<vmem>>, %arg4: memref<1x4x1xf32, #tpu.memory_space<vmem>>, %arg5: memref<2x4x256xf32, #tpu.memory_space<vmem>>, %arg6: memref<1x4x1xf32, #tpu.memory_space<vmem>>, %arg7: memref<1x4x1xf32, #tpu.memory_space<vmem>>) attributes {dimension_semantics = [], scalar_prefetch = 0 : i64, scratch_operands = 0 : i64, tpu.core_type = #tpu.core_type<tc>} {
    %c0 = arith.constant 0 : index
    %c0_0 = arith.constant 0 : index
    %c0_1 = arith.constant 0 : index
    %0 = vector.load %arg0[%c0, %c0_0, %c0_1] : memref<2x4x256xf32, #tpu.memory_space<vmem>>, vector<2x4x256xf32>
    %cst = arith.constant dense<0.000000e+00> : vector<2x4xf32>
    %1 = vector.multi_reduction <add>, %0, %cst [2] : vector<2x4x256xf32> to vector<2x4xf32>
    %2 = vector.shape_cast %1 : vector<2x4xf32> to vector<2x4x1xf32>
    %cst_2 = arith.constant dense<0.000000e+00> : vector<4x1xf32>
    %3 = vector.multi_reduction <add>, %2, %cst_2 [0] : vector<2x4x1xf32> to vector<4x1xf32>
    %4 = vector.shape_cast %3 : vector<4x1xf32> to vector<1x4x1xf32>
    %cst_3 = arith.constant 0.001953125 : f32
    %5 = vector.broadcast %cst_3 : f32 to vector<1x4x1xf32>
    %6 = arith.mulf %4, %5 : vector<1x4x1xf32>
    %7 = vector.broadcast %6 : vector<1x4x1xf32> to vector<2x4x256xf32>
    %8 = arith.subf %0, %7 : vector<2x4x256xf32>
    %9 = arith.mulf %8, %8 : vector<2x4x256xf32>
    %cst_4 = arith.constant dense<0.000000e+00> : vector<2x4xf32>
    %10 = vector.multi_reduction <add>, %9, %cst_4 [2] : vector<2x4x256xf32> to vector<2x4xf32>
    %11 = vector.shape_cast %10 : vector<2x4xf32> to vector<2x4x1xf32>
    %cst_5 = arith.constant dense<0.000000e+00> : vector<4x1xf32>
    %12 = vector.multi_reduction <add>, %11, %cst_5 [0] : vector<2x4x1xf32> to vector<4x1xf32>
    %13 = vector.shape_cast %12 : vector<4x1xf32> to vector<1x4x1xf32>
    %cst_6 = arith.constant 0.001953125 : f32
    %14 = vector.broadcast %cst_6 : f32 to vector<1x4x1xf32>
    %15 = arith.mulf %13, %14 : vector<1x4x1xf32>
    %cst_7 = arith.constant 9.99999974E-6 : f32
    %16 = vector.broadcast %cst_7 : f32 to vector<1x4x1xf32>
    %17 = arith.addf %15, %16 : vector<1x4x1xf32>
    %18 = math.rsqrt %17 : vector<1x4x1xf32>
    %c0_8 = arith.constant 0 : index
    %c0_9 = arith.constant 0 : index
    %c0_10 = arith.constant 0 : index
    %19 = vector.load %arg1[%c0_8, %c0_9, %c0_10] : memref<1x4x1xf32, #tpu.memory_space<vmem>>, vector<1x4x1xf32>
    %20 = arith.mulf %19, %18 : vector<1x4x1xf32>
    %21 = vector.broadcast %20 : vector<1x4x1xf32> to vector<2x4x256xf32>
    %22 = arith.mulf %8, %21 : vector<2x4x256xf32>
    %c0_11 = arith.constant 0 : index
    %c0_12 = arith.constant 0 : index
    %c0_13 = arith.constant 0 : index
    %23 = vector.load %arg2[%c0_11, %c0_12, %c0_13] : memref<1x4x1xf32, #tpu.memory_space<vmem>>, vector<1x4x1xf32>
    %24 = vector.broadcast %23 : vector<1x4x1xf32> to vector<2x4x256xf32>
    %25 = arith.addf %22, %24 : vector<2x4x256xf32>
    %c0_14 = arith.constant 0 : index
    %c0_15 = arith.constant 0 : index
    %c0_16 = arith.constant 0 : index
    %26 = vector.load %arg5[%c0_14, %c0_15, %c0_16] : memref<2x4x256xf32, #tpu.memory_space<vmem>>, vector<2x4x256xf32>
    tpu.vector_store %arg5[%c0_14, %c0_15, %c0_16], %25 {strides = array<i32>} : memref<2x4x256xf32, #tpu.memory_space<vmem>>, vector<2x4x256xf32>,
    %c0_17 = arith.constant 0 : index
    %c0_18 = arith.constant 0 : index
    %c0_19 = arith.constant 0 : index
    %27 = vector.load %arg3[%c0_17, %c0_18, %c0_19] : memref<1x4x1xf32, #tpu.memory_space<vmem>>, vector<1x4x1xf32>
    %cst_20 = arith.constant 0.899999976 : f32
    %28 = vector.broadcast %cst_20 : f32 to vector<1x4x1xf32>
    %29 = arith.mulf %28, %27 : vector<1x4x1xf32>
    %cst_21 = arith.constant 1.000000e-01 : f32
    %30 = vector.broadcast %cst_21 : f32 to vector<1x4x1xf32>
    %31 = arith.mulf %30, %6 : vector<1x4x1xf32>
    %32 = arith.addf %29, %31 : vector<1x4x1xf32>
    %c0_22 = arith.constant 0 : index
    %c0_23 = arith.constant 0 : index
    %c0_24 = arith.constant 0 : index
    %33 = vector.load %arg6[%c0_22, %c0_23, %c0_24] : memref<1x4x1xf32, #tpu.memory_space<vmem>>, vector<1x4x1xf32>
    tpu.vector_store %arg6[%c0_22, %c0_23, %c0_24], %32 {strides = array<i32>} : memref<1x4x1xf32, #tpu.memory_space<vmem>>, vector<1x4x1xf32>,
    %c0_25 = arith.constant 0 : index
    %c0_26 = arith.constant 0 : index
    %c0_27 = arith.constant 0 : index
    %34 = vector.load %arg4[%c0_25, %c0_26, %c0_27] : memref<1x4x1xf32, #tpu.memory_space<vmem>>, vector<1x4x1xf32>
    %cst_28 = arith.constant 0.899999976 : f32
    %35 = vector.broadcast %cst_28 : f32 to vector<1x4x1xf32>
    %36 = arith.mulf %35, %34 : vector<1x4x1xf32>
    %c0_29 = arith.constant 0 : index
    %c0_30 = arith.constant 0 : index
    %c0_31 = arith.constant 0 : index
    %37 = vector.load %arg4[%c0_29, %c0_30, %c0_31] : memref<1x4x1xf32, #tpu.memory_space<vmem>>, vector<1x4x1xf32>
    %cst_32 = arith.constant 1.000000e-01 : f32
    %38 = vector.broadcast %cst_32 : f32 to vector<1x4x1xf32>
    %39 = arith.mulf %38, %37 : vector<1x4x1xf32>
    %40 = arith.addf %36, %39 : vector<1x4x1xf32>
    %c0_33 = arith.constant 0 : index
    %c0_34 = arith.constant 0 : index
    %c0_35 = arith.constant 0 : index
    %41 = vector.load %arg7[%c0_33, %c0_34, %c0_35] : memref<1x4x1xf32, #tpu.memory_space<vmem>>, vector<1x4x1xf32>
    tpu.vector_store %arg7[%c0_33, %c0_34, %c0_35], %40 {strides = array<i32>} : memref<1x4x1xf32, #tpu.memory_space<vmem>>, vector<1x4x1xf32>,
    return
  }
}

</mosaic_0001>

<bundles_post_ra>
// kernel: tpu_custom_call.1
= control target key start
LH: loop header
LB: loop body
LE: loop exit
PB: predicated region body
PF: predicated region fallthrough
CT: control target
= control target key end

     0   :  { %vm32_vm0 = vcmask 1043456   ;;  %s280_s0 = inlined_call_operand.vmem [shape: f32[2,4,256], index: 0, kind: input, shape index: {}]   ;;  %s281_s1 = inlined_call_operand.vmem [shape: f32[1,4,1], index: 1, kind: input, shape index: {}]   ;;  %s282_s2 = inlined_call_operand.vmem [shape: f32[1,4,1], index: 2, kind: input, shape index: {}]   ;;  %s283_s3 = inlined_call_operand.vmem [shape: f32[1,4,1], index: 3, kind: input, shape index: {}]   ;;  %s284_s4 = inlined_call_operand.vmem [shape: f32[1,4,1], index: 4, kind: input, shape index: {}]   ;;  %s285_s5 = inlined_call_operand.hbm [shape: f32[2,4,256], index: 5, kind: output, shape index: {0}]   ;;  %s286_s6 = inlined_call_operand.vmem [shape: f32[1,4,1], index: 6, kind: output, shape index: {1}]   ;;  %s287_s7 = inlined_call_operand.vmem [shape: f32[1,4,1], index: 7, kind: output, shape index: {2}]  }
   0x1   :  { %v24_v0 = vld [vmem:[%s280_s0] sm:$0xff]  ;;  %v25_v1 = vld [vmem:[%s280_s0 + $0x8] sm:$0xff] }
   0x2   :  { %13 = vsyncpa [#allocation3], 0  ;;  %v28_v2 = vcombine.high %v24_v0, %v24_v0  ;;  %v33_v3 = vsel %vm32_vm0, %v24_v0, 0.0  ;;  %v29_v4 = vcombine.high %v25_v1, %v25_v1  ;;  %v38_v6 = vsel %vm32_vm0, %v25_v1, 0.0  ;;  %v121_v10 = vld [vmem:[%s284_s4] sm:$0xf] }
   0x3   :  { %v122_v11 = vmul.f32 0.9, %v121_v10  ;;  %v123_v12 = vmul.f32 0.1, %v121_v10  ;;  %vm119_vm1 = vcmask 3072   ;;  %v51_v16 = vlaneseq }
   0x4   :  { %v34_v5 = vsel %vm32_vm0, %v28_v2, 0.0  ;;  %v39_v7 = vsel %vm32_vm0, %v29_v4, 0.0  ;;  %v185_v14 = vmov 839922192   ;;  %v115_v22 = vld [vmem:[%s283_s3] sm:$0xf] }
   0x5   :  { %v35_v8 = vadd.f32 %v34_v5, %v33_v3  ;;  %v40_v9 = vadd.f32 %v39_v7, %v38_v6  ;;  %v124_v13 = vadd.f32 %v123_v12, %v122_v11  ;;  %v49_v15 = vunpack.c.l.s4 %v185_v14  ;;  %v98_v44 = vld [vmem:[%s282_s2] sm:$0xf]  ;;  %s187_s2 = smov [#allocation2]  }
   0x6   :  { %v52_v19 = vshrl.u32 %v51_v16, 7  ;;  %v116_v26 = vmul.f32 0.9, %v115_v22  ;;  %v186_v43 = vmov 0   ;;  %v82_v52 = vld [vmem:[%s281_s1] sm:$0xf] }
   0x7   :  { %36 = vadd.xlane.f32.xlu0 %v35_v8  ;;  %125 = vst.msk [vmem:[%s287_s7] sm:$0xf] %vm119_vm1, %v124_v13  ;;  %v50_v18 = vunpack.c.0.s8 %v49_v15  ;;  %156 = vset.pattern.permute.xlu1 %v186_v43  ;;  %s131_s12 = sshll.u32 %s187_s2, 4  ;;  %s132_s12 = int_to_ptr.vmem [resolvable:$true] %s131_s12 }
   0x8   :  { %155 = vset.pattern.permute.xlu0 %v186_v43  ;;  %s161_s13 = scalar_lea.vmem %s132_s12, 256  ;;  %p166_p1 = scmp.lt.s32.totalorder %s132_s12, %s132_s12 }
   0x9   :  { %v53_v24 = vsub.s32 %v50_v18, %v52_v19  ;;  %p162_p0 = scmp.ne.s32.totalorder %s132_s12, %s161_s13  ;;  %p167_p2 = scmp.lt.s32.totalorder %s161_s13, %s161_s13 }
   0xb   :  { %41 = vadd.xlane.f32.xlu0 %v40_v9  ;;  %p168_p3 = por %p167_p2, %p166_p1 }
   0xd   :  { %p169_p4 = pnand %p168_p3, %p162_p0 }
  0x94   :  { %v37_v17 = vpop.xlane.xlu0 %36 }
  0x95   :  { %v43_v21 = vsel %vm32_vm0, %v37_v17, 0.0 }
  0x98   :  { %v42_v20 = vpop.xlane.xlu0 %41 }
  0x99   :  { %v44_v23 = vsel %vm32_vm0, %v42_v20, 0.0 }
  0x9a   :  { %v45_v25 = vadd.f32 %v44_v23, %v43_v21 }
  0x9c   :  { %v46_v27 = vmul.f32 0.001953125, %v45_v25 }
  0x9e   :  { %v54_v28 = vrot.slane %v46_v27, %v53_v24  ;;  %v117_v29 = vmul.f32 0.1, %v46_v27 }
  0xa0   :  { %v57_v30 = vsub.f32 %v25_v1, %v54_v28  ;;  %v118_v31 = vadd.f32 %v117_v29, %v116_v26  ;;  %v56_v32 = vsub.f32 %v24_v0, %v54_v28 }
  0xa2   :  { %120 = vst.msk [vmem:[%s286_s6] sm:$0xf] %vm119_vm1, %v118_v31  ;;  %v58_v33 = vmul.f32 %v56_v32, %v56_v32  ;;  %v59_v34 = vmul.f32 %v57_v30, %v57_v30 }
  0xa4   :  { %v62_v35 = vcombine.high %v58_v33, %v58_v33  ;;  %v63_v36 = vcombine.high %v59_v34, %v59_v34  ;;  %v66_v37 = vsel %vm32_vm0, %v58_v33, 0.0  ;;  %v71_v41 = vsel %vm32_vm0, %v59_v34, 0.0 }
  0xa6   :  { %v67_v38 = vsel %vm32_vm0, %v62_v35, 0.0  ;;  %v72_v40 = vsel %vm32_vm0, %v63_v36, 0.0 }
  0xa7   :  { %v68_v39 = vadd.f32 %v67_v38, %v66_v37  ;;  %v73_v42 = vadd.f32 %v72_v40, %v71_v41 }
  0xa9   :  { %69 = vadd.xlane.f32.xlu1 %v68_v39 }
  0xad   :  { %74 = vadd.xlane.f32.xlu1 %v73_v42 }
  0xbe   :  { %101 = vperm.xlu1 %156, %v98_v44  }
 0x136   :  { %v70_v45 = vpop.xlane.xlu1 %69 }
 0x137   :  { %v76_v47 = vsel %vm32_vm0, %v70_v45, 0.0 }
 0x13a   :  { %v75_v46 = vpop.xlane.xlu1 %74 }
 0x13b   :  { %v77_v48 = vsel %vm32_vm0, %v75_v46, 0.0 }
 0x13c   :  { %v78_v49 = vadd.f32 %v77_v48, %v76_v47 }
 0x13e   :  { %v79_v50 = vmul.f32 0.001953125, %v78_v49  ;;  %v102_v55 = vpop.permute.xlu1 %101 }
 0x13f   :  { %v109_v58 = vrot.slane %v102_v55, %v53_v24 }
 0x140   :  { %v80_v51 = vadd.f32 1e-05, %v79_v50 }
 0x142   :  { %159 = vrsqrt.f32 %v80_v51 }
 0x14c   :  { %v160_v53 = vpop.eup %159 }
 0x14d   :  { %v83_v54 = vmul.f32 %v160_v53, %v82_v52 }
 0x14f   :  { %86 = vperm.xlu0 %155, %v83_v54  }
 0x1ce   :  { %v87_v56 = vpop.permute.xlu0 %86 }
 0x1cf   :  { %v94_v57 = vrot.slane %v87_v56, %v53_v24 }
 0x1d1   :  { %v96_v59 = vmul.f32 %v94_v57, %v56_v32  ;;  %v97_v60 = vmul.f32 %v94_v57, %v57_v30 }
 0x1d3   :  { %v111_v61 = vadd.f32 %v109_v58, %v96_v59  ;;  %v112_v62 = vadd.f32 %v109_v58, %v97_v60 }
 0x1d5   :  { %113 = vst [vmem:[#allocation2] sm:$0xff] %v111_v61  ;;  %114 = vst [vmem:[#allocation2 + $0x8] sm:$0xff] %v112_v62 }
 0x1d6   :  { %172 = shalt.err (!%p169_p4)
}
 0x1d7   :  { %s173_s15 = scalar_lea.hbm %s285_s5, 256 }
 0x1d8   :  { %p174_p5 = scmp.ne.s32.totalorder %s285_s5, %s173_s15  ;;  %p177_p6 = scmp.lt.u32.totalorder %s173_s15, %s285_s5 }
 0x1da   :  { %p179_p7 = pnand %p177_p6, %p174_p5 }
 0x1dc   :  { %182 = shalt.err (!%p179_p7)
}
 0x1dd   :  { %s188_s20 = smov 128   ;;  %s189_s21 = smov 8  }
 0x1de   :  { %137 = dma.vmem_to_hbm [thread:$0]  %s132_s12, 256, %s285_s5, [#allocation3], %s188_s20, %s188_s20, %s189_s21  }
 0x1df   :  { %183 = dma.done.wait [#allocation3], 256  }
 0x1e0   :  { %184 = vsyncadd [#allocation3], 4294967040 }
 0x1e1   :  { %149 = vsyncpa [#allocation3], 1 }

</bundles_post_ra>
